<compile_context>
chip_gen: v7x
topology: tpu7x:2x2x1
jax: 0.10.0
libtpu: 0.0.40
codegen_flags: <defaults>
</compile_context>

<pallas_src>
import jax
import jax.numpy as jnp
from jax.experimental import pallas as pl
from jax.experimental.pallas import tpu as pltpu


def _round_up(x, m):
    return (x + m - 1) // m * m


def _sublane_multiple(dtype):
    # f32 -> 8 sublanes, bf16 -> 16, int8/fp8 -> 32 (sub-32-bit packs along sublanes).
    return max(8, 32 // jnp.dtype(dtype).itemsize)


# ----------------------------- kernels ------------------------------------ #

def _linear_kernel_f32_out(x_ref, w_ref, b_ref, o_ref):
    """f32 output tile is resident across the K grid axis; accumulate into it."""
    k = pl.program_id(2)

    @pl.when(k == 0)
    def _():
        o_ref[...] = jnp.zeros_like(o_ref)

    o_ref[...] += jnp.dot(x_ref[...], w_ref[...],
                          preferred_element_type=jnp.float32)

    @pl.when(k == pl.num_programs(2) - 1)
    def _():
        o_ref[...] += b_ref[...].astype(o_ref.dtype)


def _linear_kernel_acc(x_ref, w_ref, b_ref, o_ref, acc_ref):
    """Low-precision output: accumulate in f32 VMEM scratch, cast at the end."""
    k = pl.program_id(2)

    @pl.when(k == 0)
    def _():
        acc_ref[...] = jnp.zeros_like(acc_ref)

    acc_ref[...] += jnp.dot(x_ref[...], w_ref[...],
                            preferred_element_type=jnp.float32)

    @pl.when(k == pl.num_programs(2) - 1)
    def _():
        o_ref[...] = (acc_ref[...] + b_ref[...].astype(jnp.float32)).astype(o_ref.dtype)


# --------------------------- tile selection -------------------------------- #

def _vmem_budget_bytes():
    """Per-generation scoped-VMEM budget for the double-buffered working set."""
    try:
        cap = pltpu.get_tpu_info().vmem_capacity_bytes
    except Exception:
        cap = 64 * 1024 * 1024
    if cap >= 100 * 1024 * 1024:          # v5e / v6e: 128 MiB physical VMEM
        return 96 * 1024 * 1024
    return 44 * 1024 * 1024               # v7x: 64 MiB physical -> stay <= ~48 MiB


def _pick_tiles(M, K, N, x_dtype, w_dtype, out_dtype, budget):
    sub = _sublane_multiple(x_dtype)
    x_sz = jnp.dtype(x_dtype).itemsize
    w_sz = jnp.dtype(w_dtype).itemsize
    o_sz = jnp.dtype(out_dtype).itemsize
    f32_out = jnp.dtype(out_dtype) == jnp.dtype(jnp.float32)

    # Full-batch M tile when modest: W is then read from HBM exactly once.
    tm = _round_up(M, sub) if M <= 1024 else 512
    tn = min(512, _round_up(N, 128))
    tk = min(1024, _round_up(K, 128))

    def footprint(tm, tn, tk):
        f = 2 * tm * tk * x_sz            # double-buffered activation tiles
        f += 2 * tk * tn * w_sz           # double-buffered weight tiles
        f += 2 * tn * 4                   # bias tile
        f += 2 * tm * tn * o_sz           # output tile
        if not f32_out:
            f += tm * tn * 4              # f32 accumulator scratch
        return f

    while footprint(tm, tn, tk) > budget and tk > 128:
        tk = max(128, _round_up(tk // 2, 128))
    while footprint(tm, tn, tk) > budget and tn > 128:
        tn = max(128, _round_up(tn // 2, 128))
    while footprint(tm, tn, tk) > budget and tm > sub:
        tm = max(sub, _round_up(tm // 2, sub))
    return tm, tn, tk


# ------------------------------ wrapper ------------------------------------ #

def linear_forward_pallas(x, weight, bias, *, tiles=None):
    """y = x @ weight.T + bias.
    x: (M, K); weight: (N, K) [PyTorch layout]; bias: (N,). Returns (M, N)."""
    M, K = x.shape
    N, Kw = weight.shape
    assert K == Kw and bias.shape == (N,)

    out_dtype = jnp.result_type(x.dtype, weight.dtype)
    budget = _vmem_budget_bytes()
    if tiles is None:
        tm, tn, tk = _pick_tiles(M, K, N, x.dtype, weight.dtype, out_dtype, budget)
    else:
        tm, tn, tk = tiles
        tm = min(tm, _round_up(M, _sublane_multiple(x.dtype)))
        tn = min(tn, _round_up(N, 128))
        tk = min(tk, _round_up(K, 128))

    Mp, Np, Kp = _round_up(M, tm), _round_up(N, tn), _round_up(K, tk)

    # One-time weight layout change: (N, K) -> (K, N), then pad. Under jit with
    # a static weight this transpose + pad is constant-folded, so the hot path
    # streams a (K, N) weight straight into the MXU with no per-step transpose.
    w_kn = weight.T
    if (Kp, Np) != (K, N):
        w_kn = jnp.pad(w_kn, ((0, Kp - K), (0, Np - N)))
    x_p = x if (Mp, Kp) == (M, K) else jnp.pad(x, ((0, Mp - M), (0, Kp - K)))
    b2d = (bias if Np == N else jnp.pad(bias, (0, Np - N))).reshape(1, Np)

    grid = (Mp // tm, Np // tn, Kp // tk)
    gm, gn, _ = grid

    # Real HBM traffic: x is re-read once per N-tile, W once per M-tile.
    bytes_accessed = (x_p.dtype.itemsize * Mp * Kp * gn
                      + w_kn.dtype.itemsize * Kp * Np * gm
                      + b2d.dtype.itemsize * Np * gm
                      + jnp.dtype(out_dtype).itemsize * Mp * Np)
    cost = pl.CostEstimate(flops=2 * Mp * Np * Kp, transcendentals=0,
                           bytes_accessed=int(bytes_accessed))

    f32_out = jnp.dtype(out_dtype) == jnp.dtype(jnp.float32)
    kernel = _linear_kernel_f32_out if f32_out else _linear_kernel_acc
    scratch = [] if f32_out else [pltpu.VMEM((tm, tn), jnp.float32)]

    y_p = pl.pallas_call(
        kernel,
        out_shape=jax.ShapeDtypeStruct((Mp, Np), out_dtype),
        grid=grid,
        in_specs=[
            pl.BlockSpec((tm, tk), lambda i, j, k: (i, k)),   # activations (M, K)
            pl.BlockSpec((tk, tn), lambda i, j, k: (k, j)),   # weight (K, N)
            pl.BlockSpec((1, tn), lambda i, j, k: (0, j)),    # bias (1, N)
        ],
        out_specs=pl.BlockSpec((tm, tn), lambda i, j, k: (i, j)),
        scratch_shapes=scratch,
        compiler_params=pltpu.CompilerParams(
            # N-tile axis stays parallel so v7x's 2nd TensorCore is used even
            # when tm == full M makes the M axis extent 1.
            dimension_semantics=("parallel", "parallel", "arbitrary"),
            vmem_limit_bytes=budget,
        ),
        cost_estimate=cost,
    )(x_p, w_kn, b2d)

    if (Mp, Np) != (M, N):
        y_p = y_p[:M, :N]
    return y_p


def linear_forward(x, weight, bias, *, force_pallas=False, tiles=None):
    """Matches nn.Linear semantics for (..., in_features) inputs. Tiny problems
    go to the fused XLA op (a Pallas launch can't beat it at ~KFLOP scale)."""
    K = x.shape[-1]
    x2d = x.reshape(-1, K)
    M = x2d.shape[0]
    N = weight.shape[0]
    if not force_pallas and (2 * M * N * K) < (1 << 21):
        y = x2d @ weight.T + bias
    else:
        y = linear_forward_pallas(x2d, weight, bias, tiles=tiles)
    return y.reshape(*x.shape[:-1], N)


if __name__ == "__main__":
    key = jax.random.PRNGKey(0)
    k_x, k_w, k_b, k_x2, k_w2, k_b2 = jax.random.split(key, 6)

    # Shapes implied by the module: nn.Linear(in_features=32, out_features=16)
    batch, in_features, out_features = 8, 32, 16
    bound = 1.0 / (in_features ** 0.5)
    weight = jax.random.uniform(k_w, (out_features, in_features),
                                jnp.float32, -bound, bound)
    bias = jax.random.uniform(k_b, (out_features,), jnp.float32, -bound, bound)
    x = jax.random.normal(k_x, (batch, in_features), jnp.float32)

    y = linear_forward(x, weight, bias, force_pallas=True)  # exercise the kernel
    jax.block_until_ready(y)
    y_ref = x @ weight.T + bias
    assert y.shape == (batch, out_features)
    assert jnp.allclose(y, y_ref, atol=1e-5, rtol=1e-5)

    # Second case: forces a (3, 2, 2) grid to exercise the K-axis accumulation
    # into the resident output tile, zero-padding/trimming and parallel axes.
    B2, K2, N2 = 40, 200, 208
    w2 = jax.random.uniform(k_w2, (N2, K2), jnp.float32, -0.05, 0.05)
    b2 = jax.random.uniform(k_b2, (N2,), jnp.float32, -0.05, 0.05)
    x2 = jax.random.normal(k_x2, (B2, K2), jnp.float32)
    y2 = linear_forward_pallas(x2, w2, b2, tiles=(16, 128, 128))
    jax.block_until_ready(y2)
    y2_ref = x2 @ w2.T + b2
    assert y2.shape == (B2, N2)
    assert jnp.allclose(y2, y2_ref, atol=1e-4, rtol=1e-4)

    print("KERNEL_OK")
</pallas_src>

<mosaic_0001>
module attributes {stable_mosaic.version = 11 : i64} {
  func.func @_linear_kernel_f32_out(%arg0: i32, %arg1: i32, %arg2: i32, %arg3: memref<8x128xf32, #tpu.memory_space<vmem>>, %arg4: memref<128x128xf32, #tpu.memory_space<vmem>>, %arg5: memref<1x128xf32, #tpu.memory_space<vmem>>, %arg6: memref<8x128xf32, #tpu.memory_space<vmem>>) attributes {dimension_semantics = [#tpu.dimension_semantics<parallel>, #tpu.dimension_semantics<parallel>, #tpu.dimension_semantics<arbitrary>], iteration_bounds = array<i64: 1, 1, 1>, scalar_prefetch = 0 : i64, scratch_operands = 0 : i64, tpu.core_type = #tpu.core_type<tc>, window_params = [{transform_indices = @transform_0, window_bounds = array<i64: 8, 128>}, {transform_indices = @transform_1, window_bounds = array<i64: 128, 128>}, {transform_indices = @transform_2, window_bounds = array<i64: 1, 128>}, {transform_indices = @transform_3, window_bounds = array<i64: 8, 128>}]} {
    %c0_i32 = arith.constant 0 : i32
    %0 = arith.cmpi eq, %arg2, %c0_i32 : i32
    %1 = arith.extui %0 : i1 to i32
    %c0_i32_0 = arith.constant 0 : i32
    %2 = arith.cmpi ne, %1, %c0_i32_0 : i32
    scf.if %2 {
      %cst_10 = arith.constant 0.000000e+00 : f32
      %12 = vector.broadcast %cst_10 : f32 to vector<8x128xf32>
      %c0_11 = arith.constant 0 : index
      %c0_12 = arith.constant 0 : index
      %13 = vector.load %arg6[%c0_11, %c0_12] : memref<8x128xf32, #tpu.memory_space<vmem>>, vector<8x128xf32>
      tpu.vector_store %arg6[%c0_11, %c0_12], %12 {strides = array<i32>} : memref<8x128xf32, #tpu.memory_space<vmem>>, vector<8x128xf32>,
    } else {
    }
    %c0 = arith.constant 0 : index
    %c0_1 = arith.constant 0 : index
    %3 = vector.load %arg6[%c0, %c0_1] : memref<8x128xf32, #tpu.memory_space<vmem>>, vector<8x128xf32>
    %c0_2 = arith.constant 0 : index
    %c0_3 = arith.constant 0 : index
    %4 = vector.load %arg3[%c0_2, %c0_3] : memref<8x128xf32, #tpu.memory_space<vmem>>, vector<8x128xf32>
    %c0_4 = arith.constant 0 : index
    %c0_5 = arith.constant 0 : index
    %5 = vector.load %arg4[%c0_4, %c0_5] : memref<128x128xf32, #tpu.memory_space<vmem>>, vector<128x128xf32>
    %cst = arith.constant dense<0.000000e+00> : vector<8x128xf32>
    %6 = tpu.matmul %4, %5, %cst {dimension_numbers = #tpu.dot_dimension_numbers<[1], [0], [0], [1], [0, 0, 1, 1], [], []>} : vector<8x128xf32>, vector<128x128xf32>, vector<8x128xf32> -> vector<8x128xf32>
    %7 = arith.addf %3, %6 : vector<8x128xf32>
    %c0_6 = arith.constant 0 : index
    %c0_7 = arith.constant 0 : index
    %8 = vector.load %arg6[%c0_6, %c0_7] : memref<8x128xf32, #tpu.memory_space<vmem>>, vector<8x128xf32>
    tpu.vector_store %arg6[%c0_6, %c0_7], %7 {strides = array<i32>} : memref<8x128xf32, #tpu.memory_space<vmem>>, vector<8x128xf32>,
    %c0_i32_8 = arith.constant 0 : i32
    %9 = arith.cmpi eq, %arg2, %c0_i32_8 : i32
    %10 = arith.extui %9 : i1 to i32
    %c0_i32_9 = arith.constant 0 : i32
    %11 = arith.cmpi ne, %10, %c0_i32_9 : i32
    scf.if %11 {
      %c0_10 = arith.constant 0 : index
      %c0_11 = arith.constant 0 : index
      %12 = vector.load %arg6[%c0_10, %c0_11] : memref<8x128xf32, #tpu.memory_space<vmem>>, vector<8x128xf32>
      %c0_12 = arith.constant 0 : index
      %c0_13 = arith.constant 0 : index
      %13 = vector.load %arg5[%c0_12, %c0_13] : memref<1x128xf32, #tpu.memory_space<vmem>>, vector<1x128xf32>
      %14 = vector.broadcast %13 : vector<1x128xf32> to vector<8x128xf32>
      %15 = arith.addf %12, %14 : vector<8x128xf32>
      %c0_14 = arith.constant 0 : index
      %c0_15 = arith.constant 0 : index
      %16 = vector.load %arg6[%c0_14, %c0_15] : memref<8x128xf32, #tpu.memory_space<vmem>>, vector<8x128xf32>
      tpu.vector_store %arg6[%c0_14, %c0_15], %15 {strides = array<i32>} : memref<8x128xf32, #tpu.memory_space<vmem>>, vector<8x128xf32>,
    } else {
    }
    return
  }
  func.func @transform_0(%arg0: i32, %arg1: i32, %arg2: i32) -> (i32, i32) {
    %c0_i32 = arith.constant 0 : i32
    return %arg0, %arg2 : i32, i32
  }
  func.func @transform_1(%arg0: i32, %arg1: i32, %arg2: i32) -> (i32, i32) {
    %c0_i32 = arith.constant 0 : i32
    return %arg2, %arg1 : i32, i32
  }
  func.func @transform_2(%arg0: i32, %arg1: i32, %arg2: i32) -> (i32, i32) {
    %c0_i32 = arith.constant 0 : i32
    %c0_i32_0 = arith.constant 0 : i32
    return %c0_i32, %arg1 : i32, i32
  }
  func.func @transform_3(%arg0: i32, %arg1: i32, %arg2: i32) -> (i32, i32) {
    %c0_i32 = arith.constant 0 : i32
    return %arg0, %arg1 : i32, i32
  }
}

</mosaic_0001>

<bundles_post_ra>
// kernel: tpu_custom_call.1
= control target key start
LH: loop header
LB: loop body
LE: loop exit
PB: predicated region body
PF: predicated region fallthrough
CT: control target
= control target key end

     0   :  { %8 = vsyncpa [#allocation3], 0  ;;  %s396_s0 = inlined_call_operand.hbm [shape: f32[8,128], index: 0, kind: input, shape index: {}]   ;;  %s397_s1 = inlined_call_operand.hbm [shape: f32[128,128], index: 1, kind: input, shape index: {}]   ;;  %s398_s2 = inlined_call_operand.vmem [shape: f32[1,128], index: 2, kind: input, shape index: {}]   ;;  %s399_s3 = inlined_call_operand.hbm [shape: f32[8,128], index: 3, kind: output, shape index: {}]  }
   0x1   :  { %9 = vsyncpa [#allocation6], 0 }
   0x2   :  { %10 = vsyncpa [#allocation4], 0  ;;  %s322_s12 = smov [#allocation2]   ;;  %s323_s14 = smov [#allocation5]  }
   0x3   :  { %s17_s13 = sshll.u32 %s322_s12, 4  ;;  %s26_s15 = sshll.u32 %s323_s14, 4  ;;  %s18_s13 = int_to_ptr.vmem [resolvable:$true] %s17_s13  ;;  %s350_s15 = int_to_ptr.vmem [resolvable:$true] %s26_s15 }
   0x4   :  { %s250_s18 = scalar_lea.hbm %s396_s0, 128 }
   0x5   :  { %p251_p0 = scmp.ne.s32.totalorder %s396_s0, %s250_s18  ;;  %p254_p1 = scmp.lt.u32.totalorder %s250_s18, %s396_s0 }
   0x7   :  { %p256_p2 = pnand %p254_p1, %p251_p0 }
   0x9   :  { %259 = shalt.err (!%p256_p2)
}
   0xa   :  { %s260_s23 = scalar_lea.vmem %s18_s13, 128  ;;  %p265_p4 = scmp.lt.s32.totalorder %s18_s13, %s18_s13 }
   0xb   :  { %p261_p3 = scmp.ne.s32.totalorder %s18_s13, %s260_s23  ;;  %p266_p5 = scmp.lt.s32.totalorder %s260_s23, %s260_s23 }
   0xd   :  { %p267_p6 = por %p266_p5, %p265_p4 }
   0xf   :  { %p268_p7 = pnand %p267_p6, %p261_p3 }
  0x11   :  { %271 = shalt.err (!%p268_p7)
}
  0x12   :  { %20 = dma.hbm_to_vmem [thread:$0]  %s396_s0, 128, %s18_s13, [#allocation3]  }
  0x13   :  { %s272_s28 = scalar_lea.hbm %s397_s1, 2048 }
  0x14   :  { %p273_p8 = scmp.ne.s32.totalorder %s397_s1, %s272_s28  ;;  %p276_p9 = scmp.lt.u32.totalorder %s272_s28, %s397_s1 }
  0x16   :  { %p278_p10 = pnand %p276_p9, %p273_p8 }
  0x18   :  { %281 = shalt.err (!%p278_p10)
}
  0x19   :  { %s282_s6 = scalar_lea.vmem %s350_s15, 2048  ;;  %p287_p12 = scmp.lt.s32.totalorder %s350_s15, %s350_s15 }
  0x1a   :  { %p283_p11 = scmp.ne.s32.totalorder %s350_s15, %s282_s6  ;;  %p288_p13 = scmp.lt.s32.totalorder %s282_s6, %s282_s6 }
  0x1c   :  { %p289_p0 = por %p288_p13, %p287_p12 }
  0x1e   :  { %p290_p1 = pnand %p289_p0, %p283_p11 }
  0x20   :  { %293 = shalt.err (!%p290_p1)
}
  0x21   :  { %s324_s0 = smov 128   ;;  %s325_s7 = smov 8  }
  0x22   :  { %32 = dma.hbm_to_vmem [thread:$0]  %s397_s1, 2048, %s350_s15, [#allocation6], %s324_s0, %s324_s0, %s325_s7  }
  0x23   :  { %316 = dma.done.wait [#allocation3], 128  }
  0x24   :  { %317 = vsyncadd [#allocation3], 4294967168 }
  0x25   :  { %318 = dma.done.wait [#allocation6], 2048  }
  0x26   :  { %319 = vsyncadd [#allocation6], 4294965248  ;;  %v326_v0 = vmov 0.0|0.0   ;;  %vm327_vm0 = vmmov 0   ;;  %v328_v1 = vmov 0.0   ;;  %v48_v2 = vld [vmem:[#allocation5] sm:$0xff] }
  0x27   :  { %218 = vmatprep.subr.bf16.mxu0 %v326_v0  ;;  %215 = vmatprep.mubr.msk.f32.mxu0 %vm327_vm0, %v328_v1  ;;  %v49_v3 = vld [vmem:[#allocation5 + $0x8] sm:$0xff]  ;;  %v50_v4 = vld [vmem:[#allocation5 + $0x10] sm:$0xff]  ;;  %v51_v6 = vld [vmem:[#allocation5 + $0x18] sm:$0xff]  ;;  %s329_s11 = smov [#allocation7]  }
  0x28   :  { %v219_v5 = vpack.c.bf16 %v49_v3, %v48_v2  ;;  %v222_v7 = vpack.c.bf16 %v51_v6, %v50_v4  ;;  %v52_v8 = vld [vmem:[#allocation5 + $0x20] sm:$0xff]  ;;  %v53_v9 = vld [vmem:[#allocation5 + $0x28] sm:$0xff]  ;;  %v54_v11 = vld [vmem:[#allocation5 + $0x30] sm:$0xff]  ;;  %s155_s12 = sshll.u32 %s329_s11, 4  ;;  %s156_s12 = int_to_ptr.vmem [resolvable:$true] %s155_s12 }
  0x29   :  { %v225_v10 = vpack.c.bf16 %v53_v9, %v52_v8  ;;  %v55_v12 = vld [vmem:[#allocation5 + $0x38] sm:$0xff]  ;;  %v56_v14 = vld [vmem:[#allocation5 + $0x40] sm:$0xff]  ;;  %v57_v15 = vld [vmem:[#allocation5 + $0x48] sm:$0xff]  ;;  %s294_s13 = scalar_lea.vmem %s156_s12, 128  ;;  %p299_p3 = scmp.lt.s32.totalorder %s156_s12, %s156_s12 }
  0x2a   :  { %220 = vmatpush3.bf16.msra.mxu0 %v219_v5  ;;  %v228_v13 = vpack.c.bf16 %v55_v12, %v54_v11  ;;  %v231_v16 = vpack.c.bf16 %v57_v15, %v56_v14  ;;  %v58_v17 = vld [vmem:[#allocation5 + $0x50] sm:$0xff]  ;;  %v59_v18 = vld [vmem:[#allocation5 + $0x58] sm:$0xff]  ;;  %v60_v20 = vld [vmem:[#allocation5 + $0x60] sm:$0xff]  ;;  %p295_p2 = scmp.ne.s32.totalorder %s156_s12, %s294_s13  ;;  %p300_p4 = scmp.lt.s32.totalorder %s294_s13, %s294_s13 }
  0x2b   :  { %221 = vmatprep.subr.bf16.mxu0 %v326_v0  ;;  %v234_v19 = vpack.c.bf16 %v59_v18, %v58_v17  ;;  %v61_v21 = vld [vmem:[#allocation5 + $0x68] sm:$0xff]  ;;  %v62_v23 = vld [vmem:[#allocation5 + $0x70] sm:$0xff]  ;;  %v63_v24 = vld [vmem:[#allocation5 + $0x78] sm:$0xff] }
  0x2c   :  { %v237_v22 = vpack.c.bf16 %v61_v21, %v60_v20  ;;  %v240_v25 = vpack.c.bf16 %v63_v24, %v62_v23  ;;  %v47_v26 = vld [vmem:[#allocation2] sm:$0xff]  ;;  %p301_p5 = por %p300_p4, %p299_p3 }
  0x2d   :  { %v165_v28 = vld [vmem:[%s398_s2] ss:$0 sm:$0xff] }
  0x2e   :  { %223 = vmatpush3.bf16.msra.mxu0 %v222_v7  ;;  %p302_p6 = pnand %p301_p5, %p295_p2 }
  0x2f   :  { %224 = vmatprep.subr.bf16.mxu0 %v326_v0 }
  0x32   :  { %226 = vmatpush3.bf16.msra.mxu0 %v225_v10 }
  0x33   :  { %227 = vmatprep.subr.bf16.mxu0 %v326_v0 }
  0x36   :  { %229 = vmatpush3.bf16.msra.mxu0 %v228_v13 }
  0x37   :  { %230 = vmatprep.subr.bf16.mxu0 %v326_v0 }
  0x3a   :  { %232 = vmatpush3.bf16.msra.mxu0 %v231_v16 }
  0x3b   :  { %233 = vmatprep.subr.bf16.mxu0 %v326_v0 }
  0x3e   :  { %235 = vmatpush3.bf16.msra.mxu0 %v234_v19 }
  0x3f   :  { %236 = vmatprep.subr.bf16.mxu0 %v326_v0 }
  0x42   :  { %238 = vmatpush3.bf16.msra.mxu0 %v237_v22 }
  0x43   :  { %239 = vmatprep.subr.bf16.mxu0 %v326_v0 }
  0x46   :  { %241 = vmatpush3.bf16.msra.mxu0 %v240_v25 }
  0x49   :  { %216 = vmatmul.mubr.f32.vlgmr.msra.gmra.mrb[0].mxu0 %v47_v26 }
 0x11c   :  { %v130_v27 = vpop.f32.mrb[0].mxu0 }
 0x11d   :  { %v217_v29 = vpop.f32.mrb[1].mxu0  ;;  %v147_v30 = vadd.f32 %v165_v28, %v130_v27 }
 0x11f   :  { %148 = vst [vmem:[#allocation7] sm:$0xff] %v147_v30 }
 0x120   :  { %305 = shalt.err (!%p302_p6)
}
 0x121   :  { %s306_s16 = scalar_lea.hbm %s399_s3, 128 }
 0x122   :  { %p307_p7 = scmp.ne.s32.totalorder %s399_s3, %s306_s16  ;;  %p310_p8 = scmp.lt.u32.totalorder %s306_s16, %s399_s3 }
 0x124   :  { %p312_p9 = pnand %p310_p8, %p307_p7 }
 0x126   :  { %315 = shalt.err (!%p312_p9)
}
 0x127   :  { %158 = dma.vmem_to_hbm [thread:$0]  %s156_s12, 128, %s399_s3, [#allocation4]  }
 0x128   :  { %320 = dma.done.wait [#allocation4], 128  }
 0x129   :  { %321 = vsyncadd [#allocation4], 4294967168 }
 0x12a   :  { %162 = vsyncpa [#allocation3], 1 }
 0x12b   :  { %163 = vsyncpa [#allocation6], 1 }
 0x12c   :  { %164 = vsyncpa [#allocation4], 1 }

</bundles_post_ra>
